<compile_context>
chip_gen: v7x
topology: tpu7x:2x2x1
jax: 0.10.0
libtpu: 0.0.40
codegen_flags: <defaults>
</compile_context>

<pallas_src>
import functools

import jax
import jax.numpy as jnp
from jax.experimental import pallas as pl
from jax.experimental.pallas import tpu as pltpu

HIDDEN = 256
LANE = 128


def _round_up(n, m):
    return pl.cdiv(n, m) * m


def mlp_kernel(x_ref, w1_ref, b1_ref, w2_ref, b2_ref, w3_ref, b3_ref, o_ref):
    """Whole 3-layer MLP forward for one batch tile, fused in VMEM.

    Weights are bf16; matmuls accumulate in f32 on the MXU; biases/output f32.
    """
    x = x_ref[...].astype(jnp.bfloat16)
    h1 = jnp.dot(x, w1_ref[...], preferred_element_type=jnp.float32) + b1_ref[...]
    h1 = jnp.maximum(h1, 0.0).astype(jnp.bfloat16)
    h2 = jnp.dot(h1, w2_ref[...], preferred_element_type=jnp.float32) + b2_ref[...]
    h2 = jnp.maximum(h2, 0.0).astype(jnp.bfloat16)
    o = jnp.dot(h2, w3_ref[...], preferred_element_type=jnp.float32) + b3_ref[...]
    o_ref[...] = o.astype(o_ref.dtype)


def _pick_block_b(B):
    """Batch-tile size heuristic (see module docstring)."""
    B16 = _round_up(B, 16)
    if B16 <= 256:
        return B16                       # one tile
    if B16 <= 4096:
        return _round_up(pl.cdiv(B16, 2), 16)   # two tiles -> both v7x TCs
    return 2048                          # fat tiles for very large batches


@functools.partial(jax.jit, static_argnames=("block_b", "trim_output"))
def network_forward(x, params, *, block_b=None, trim_output=True):
    """x: (B, input_size) float32. params: transposed bf16 weights, f32 biases.

    Returns (B, output_size) f32 by default; with trim_output=False returns the
    lane-padded (B_pad, out_pad) buffer (no extra slice copy on the HBM path).
    """
    w1, b1, w2, b2, w3, b3 = (
        params["w1"], params["b1"], params["w2"], params["b2"],
        params["w3"], params["b3"],
    )
    B, in_dim = x.shape
    out_dim = w3.shape[1]

    # Lane-dense output: pad fc3 output features up to a multiple of 128 lanes
    # (exactly the next multiple — no rounding to 256).
    out_pad = max(_round_up(out_dim, LANE), LANE)
    if out_pad != out_dim:
        w3 = jnp.pad(w3, ((0, 0), (0, out_pad - out_dim)))
        b3 = jnp.pad(b3, ((0, 0), (0, out_pad - out_dim)))

    if block_b is None:
        block_b = _pick_block_b(B)
    B_pad = _round_up(B, block_b)
    if B_pad != B:
        x = jnp.pad(x, ((0, B_pad - B), (0, 0)))

    grid = (B_pad // block_b,)
    full = lambda i: (0, 0)  # weights/biases: same full block every grid step

    # Always "parallel": no-op on single-TC v5e/v6e, shards across v7x's 2 TCs.
    if block_b > 1024:
        # Fat tiles: raise scoped VMEM above v5e's 16 MiB default (32 MiB is
        # within every generation's physical budget).
        compiler_params = pltpu.CompilerParams(
            dimension_semantics=("parallel",),
            vmem_limit_bytes=32 * 1024 * 1024,
        )
    else:
        compiler_params = pltpu.CompilerParams(
            dimension_semantics=("parallel",))

    out = pl.pallas_call(
        mlp_kernel,
        out_shape=jax.ShapeDtypeStruct((B_pad, out_pad), jnp.float32),
        grid=grid,
        in_specs=[
            pl.BlockSpec((block_b, in_dim), lambda i: (i, 0)),   # x tile
            pl.BlockSpec((in_dim, HIDDEN), full),                # w1 (bf16)
            pl.BlockSpec((1, HIDDEN), full),                     # b1
            pl.BlockSpec((HIDDEN, HIDDEN), full),                # w2 (bf16)
            pl.BlockSpec((1, HIDDEN), full),                     # b2
            pl.BlockSpec((HIDDEN, out_pad), full),               # w3 (bf16, lane-padded)
            pl.BlockSpec((1, out_pad), full),                    # b3 (lane-padded)
        ],
        out_specs=pl.BlockSpec((block_b, out_pad), lambda i: (i, 0)),
        compiler_params=compiler_params,
    )(x, w1, b1, w2, b2, w3, b3)

    if trim_output:
        return out[:B, :out_dim]
    return out


def init_params(key, input_size, output_size):
    """PyTorch-Linear-style U(-1/sqrt(fan_in), +1/sqrt(fan_in)) init.

    Weights stored transposed (in_features, out_features) in bf16; biases f32.
    """
    def linear(key, fan_in, fan_out):
        kw, kb = jax.random.split(key)
        bound = 1.0 / jnp.sqrt(jnp.float32(fan_in))
        w = jax.random.uniform(kw, (fan_in, fan_out), jnp.float32, -bound, bound)
        b = jax.random.uniform(kb, (1, fan_out), jnp.float32, -bound, bound)
        return w.astype(jnp.bfloat16), b

    k1, k2, k3 = jax.random.split(key, 3)
    w1, b1 = linear(k1, input_size, HIDDEN)
    w2, b2 = linear(k2, HIDDEN, HIDDEN)
    w3, b3 = linear(k3, HIDDEN, output_size)
    return {"w1": w1, "b1": b1, "w2": w2, "b2": b2, "w3": w3, "b3": b3}


def reference_forward(x, p):
    """Pure-JAX reference with identical bf16-operand / f32-accumulate math."""
    h1 = jnp.dot(x.astype(jnp.bfloat16), p["w1"],
                 preferred_element_type=jnp.float32) + p["b1"]
    h1 = jnp.maximum(h1, 0.0)
    h2 = jnp.dot(h1.astype(jnp.bfloat16), p["w2"],
                 preferred_element_type=jnp.float32) + p["b2"]
    h2 = jnp.maximum(h2, 0.0)
    return jnp.dot(h2.astype(jnp.bfloat16), p["w3"],
                   preferred_element_type=jnp.float32) + p["b3"]


if __name__ == "__main__":
    key = jax.random.PRNGKey(0)
    kx, kx2, kx3, kp = jax.random.split(key, 4)

    input_size = 32   # e.g. mujoco observation dim
    output_size = 8   # e.g. action dim

    params = init_params(kp, input_size, output_size)

    # 1) Small batch: single fat grid step (block_b = 16, grid = (1,)).
    batch = 16
    x = jax.random.normal(kx, (batch, input_size), jnp.float32)
    out = jax.block_until_ready(network_forward(x, params))
    ref = reference_forward(x, params)
    assert out.shape == (batch, output_size)
    assert jnp.allclose(out, ref, atol=2e-3, rtol=2e-3), "mismatch vs JAX reference"

    # 2) Non-divisible batch with explicit block_b: zero-padding + multi-step grid.
    batch2 = 40
    x2 = jax.random.normal(kx2, (batch2, input_size), jnp.float32)
    out2 = jax.block_until_ready(network_forward(x2, params, block_b=16))
    ref2 = reference_forward(x2, params)
    assert out2.shape == (batch2, output_size)
    assert jnp.allclose(out2, ref2, atol=2e-3, rtol=2e-3), "mismatch (padded batch)"

    # 3) Medium batch: auto-split into two tiles (grid=(2,), both v7x TCs),
    #    plus the un-trimmed lane-padded output path.
    batch3 = 300
    x3 = jax.random.normal(kx3, (batch3, input_size), jnp.float32)
    out3 = jax.block_until_ready(network_forward(x3, params))
    ref3 = reference_forward(x3, params)
    assert out3.shape == (batch3, output_size)
    assert jnp.allclose(out3, ref3, atol=2e-3, rtol=2e-3), "mismatch (2-tile batch)"
    out3_pad = jax.block_until_ready(network_forward(x3, params, trim_output=False))
    assert out3_pad.shape[1] == LANE
    assert jnp.allclose(out3_pad[:batch3, :output_size], ref3, atol=2e-3, rtol=2e-3), \
        "mismatch (untrimmed output)"

    print("KERNEL_OK")
</pallas_src>

<mosaic_0001>
module attributes {stable_mosaic.version = 11 : i64} {
  func.func @mlp_kernel(%arg0: i32, %arg1: memref<16x32xf32, #tpu.memory_space<vmem>>, %arg2: memref<32x256xbf16, #tpu.memory_space<vmem>>, %arg3: memref<1x256xf32, #tpu.memory_space<vmem>>, %arg4: memref<256x256xbf16, #tpu.memory_space<vmem>>, %arg5: memref<1x256xf32, #tpu.memory_space<vmem>>, %arg6: memref<256x128xbf16, #tpu.memory_space<vmem>>, %arg7: memref<1x128xf32, #tpu.memory_space<vmem>>, %arg8: memref<16x128xf32, #tpu.memory_space<vmem>>) attributes {dimension_semantics = [#tpu.dimension_semantics<parallel>], iteration_bounds = array<i64: 1>, scalar_prefetch = 0 : i64, scratch_operands = 0 : i64, tpu.core_type = #tpu.core_type<tc>, window_params = [{transform_indices = @transform_0, window_bounds = array<i64: 16, 32>}, {pipeline_mode = #tpu.pipeline_mode<synchronous>, transform_indices = @transform_1, window_bounds = array<i64: 32, 256>}, {pipeline_mode = #tpu.pipeline_mode<synchronous>, transform_indices = @transform_2, window_bounds = array<i64: 1, 256>}, {pipeline_mode = #tpu.pipeline_mode<synchronous>, transform_indices = @transform_3, window_bounds = array<i64: 256, 256>}, {pipeline_mode = #tpu.pipeline_mode<synchronous>, transform_indices = @transform_4, window_bounds = array<i64: 1, 256>}, {pipeline_mode = #tpu.pipeline_mode<synchronous>, transform_indices = @transform_5, window_bounds = array<i64: 256, 128>}, {pipeline_mode = #tpu.pipeline_mode<synchronous>, transform_indices = @transform_6, window_bounds = array<i64: 1, 128>}, {transform_indices = @transform_7, window_bounds = array<i64: 16, 128>}]} {
    %c0 = arith.constant 0 : index
    %c0_0 = arith.constant 0 : index
    %0 = vector.load %arg1[%c0, %c0_0] : memref<16x32xf32, #tpu.memory_space<vmem>>, vector<16x32xf32>
    %1 = arith.truncf %0 : vector<16x32xf32> to vector<16x32xbf16>
    %c0_1 = arith.constant 0 : index
    %c0_2 = arith.constant 0 : index
    %2 = vector.load %arg2[%c0_1, %c0_2] : memref<32x256xbf16, #tpu.memory_space<vmem>>, vector<32x256xbf16>
    %cst = arith.constant dense<0.000000e+00> : vector<16x256xf32>
    %3 = tpu.matmul %1, %2, %cst {dimension_numbers = #tpu.dot_dimension_numbers<[1], [0], [0], [1], [0, 0, 1, 1], [], []>} : vector<16x32xbf16>, vector<32x256xbf16>, vector<16x256xf32> -> vector<16x256xf32>
    %c0_3 = arith.constant 0 : index
    %c0_4 = arith.constant 0 : index
    %4 = vector.load %arg3[%c0_3, %c0_4] : memref<1x256xf32, #tpu.memory_space<vmem>>, vector<1x256xf32>
    %5 = vector.broadcast %4 : vector<1x256xf32> to vector<16x256xf32>
    %6 = arith.addf %3, %5 : vector<16x256xf32>
    %cst_5 = arith.constant 0.000000e+00 : f32
    %7 = vector.broadcast %cst_5 : f32 to vector<16x256xf32>
    %8 = arith.maximumf %6, %7 : vector<16x256xf32>
    %9 = arith.truncf %8 : vector<16x256xf32> to vector<16x256xbf16>
    %c0_6 = arith.constant 0 : index
    %c0_7 = arith.constant 0 : index
    %10 = vector.load %arg4[%c0_6, %c0_7] : memref<256x256xbf16, #tpu.memory_space<vmem>>, vector<256x256xbf16>
    %cst_8 = arith.constant dense<0.000000e+00> : vector<16x256xf32>
    %11 = tpu.matmul %9, %10, %cst_8 {dimension_numbers = #tpu.dot_dimension_numbers<[1], [0], [0], [1], [0, 0, 1, 1], [], []>} : vector<16x256xbf16>, vector<256x256xbf16>, vector<16x256xf32> -> vector<16x256xf32>
    %c0_9 = arith.constant 0 : index
    %c0_10 = arith.constant 0 : index
    %12 = vector.load %arg5[%c0_9, %c0_10] : memref<1x256xf32, #tpu.memory_space<vmem>>, vector<1x256xf32>
    %13 = vector.broadcast %12 : vector<1x256xf32> to vector<16x256xf32>
    %14 = arith.addf %11, %13 : vector<16x256xf32>
    %cst_11 = arith.constant 0.000000e+00 : f32
    %15 = vector.broadcast %cst_11 : f32 to vector<16x256xf32>
    %16 = arith.maximumf %14, %15 : vector<16x256xf32>
    %17 = arith.truncf %16 : vector<16x256xf32> to vector<16x256xbf16>
    %c0_12 = arith.constant 0 : index
    %c0_13 = arith.constant 0 : index
    %18 = vector.load %arg6[%c0_12, %c0_13] : memref<256x128xbf16, #tpu.memory_space<vmem>>, vector<256x128xbf16>
    %cst_14 = arith.constant dense<0.000000e+00> : vector<16x128xf32>
    %19 = tpu.matmul %17, %18, %cst_14 {dimension_numbers = #tpu.dot_dimension_numbers<[1], [0], [0], [1], [0, 0, 1, 1], [], []>} : vector<16x256xbf16>, vector<256x128xbf16>, vector<16x128xf32> -> vector<16x128xf32>
    %c0_15 = arith.constant 0 : index
    %c0_16 = arith.constant 0 : index
    %20 = vector.load %arg7[%c0_15, %c0_16] : memref<1x128xf32, #tpu.memory_space<vmem>>, vector<1x128xf32>
    %21 = vector.broadcast %20 : vector<1x128xf32> to vector<16x128xf32>
    %22 = arith.addf %19, %21 : vector<16x128xf32>
    %c0_17 = arith.constant 0 : index
    %c0_18 = arith.constant 0 : index
    %23 = vector.load %arg8[%c0_17, %c0_18] : memref<16x128xf32, #tpu.memory_space<vmem>>, vector<16x128xf32>
    tpu.vector_store %arg8[%c0_17, %c0_18], %22 {strides = array<i32>} : memref<16x128xf32, #tpu.memory_space<vmem>>, vector<16x128xf32>,
    return
  }
  func.func @transform_0(%arg0: i32) -> (i32, i32) {
    %c0_i32 = arith.constant 0 : i32
    %c0_i32_0 = arith.constant 0 : i32
    return %arg0, %c0_i32 : i32, i32
  }
  func.func @transform_1(%arg0: i32) -> (i32, i32) {
    %c0_i32 = arith.constant 0 : i32
    %c0_i32_0 = arith.constant 0 : i32
    %c0_i32_1 = arith.constant 0 : i32
    return %c0_i32, %c0_i32_0 : i32, i32
  }
  func.func @transform_2(%arg0: i32) -> (i32, i32) {
    %c0_i32 = arith.constant 0 : i32
    %c0_i32_0 = arith.constant 0 : i32
    %c0_i32_1 = arith.constant 0 : i32
    return %c0_i32, %c0_i32_0 : i32, i32
  }
  func.func @transform_3(%arg0: i32) -> (i32, i32) {
    %c0_i32 = arith.constant 0 : i32
    %c0_i32_0 = arith.constant 0 : i32
    %c0_i32_1 = arith.constant 0 : i32
    return %c0_i32, %c0_i32_0 : i32, i32
  }
  func.func @transform_4(%arg0: i32) -> (i32, i32) {
    %c0_i32 = arith.constant 0 : i32
    %c0_i32_0 = arith.constant 0 : i32
    %c0_i32_1 = arith.constant 0 : i32
    return %c0_i32, %c0_i32_0 : i32, i32
  }
  func.func @transform_5(%arg0: i32) -> (i32, i32) {
    %c0_i32 = arith.constant 0 : i32
    %c0_i32_0 = arith.constant 0 : i32
    %c0_i32_1 = arith.constant 0 : i32
    return %c0_i32, %c0_i32_0 : i32, i32
  }
  func.func @transform_6(%arg0: i32) -> (i32, i32) {
    %c0_i32 = arith.constant 0 : i32
    %c0_i32_0 = arith.constant 0 : i32
    %c0_i32_1 = arith.constant 0 : i32
    return %c0_i32, %c0_i32_0 : i32, i32
  }
  func.func @transform_7(%arg0: i32) -> (i32, i32) {
    %c0_i32 = arith.constant 0 : i32
    %c0_i32_0 = arith.constant 0 : i32
    return %arg0, %c0_i32 : i32, i32
  }
}

</mosaic_0001>

<bundles_post_ra>
// kernel: network_forward.1
= control target key start
LH: loop header
LB: loop body
LE: loop exit
PB: predicated region body
PF: predicated region fallthrough
CT: control target
= control target key end

     0   :  { %v701_v1 = vmov 0   ;;  %vm66_vm0 = vcmask 261120   ;;  %v36_v51 = vlaneseq  ;;  %s919_s1 = inlined_call_operand.vmem [shape: bf16[32,256], index: 1, kind: input, shape index: {}]   ;;  %s920_s0 = inlined_call_operand.vmem [shape: f32[16,32], index: 0, kind: input, shape index: {}]   ;;  %s921_s3 = inlined_call_operand.vmem [shape: bf16[256,256], index: 3, kind: input, shape index: {}]   ;;  %s922_s5 = inlined_call_operand.vmem [shape: bf16[256,128], index: 5, kind: input, shape index: {}]   ;;  %s923_s2 = inlined_call_operand.vmem [shape: f32[1,256], index: 2, kind: input, shape index: {}]   ;;  %s924_s4 = inlined_call_operand.vmem [shape: f32[1,256], index: 4, kind: input, shape index: {}]   ;;  %s925_s6 = inlined_call_operand.vmem [shape: f32[1,128], index: 6, kind: input, shape index: {}]   ;;  %s926_s7 = inlined_call_operand.vmem [shape: f32[16,128], index: 7, kind: output, shape index: {}]  }
   0x1   :  { %v631_v0 = vld [vmem:[%s919_s1 + $0x4] ss:$8 sps:$4 sm:$0xff]   ;;  %102 = vmatprep.mubr.bf16.mxu0 %v701_v1  ;;  %v633_v2 = vld [vmem:[%s919_s1] ss:$8 sps:$4 sm:$0xff]   ;;  %v634_v3 = vld [vmem:[%s919_s1 + $0x14] ss:$8 sps:$4 sm:$0xff]  }
   0x2   :  { %70 = vmatprep.subr.bf16.mxu0 %v631_v0  ;;  %v636_v4 = vld [vmem:[%s919_s1 + $0x10] ss:$8 sps:$4 sm:$0xff]   ;;  %v27_v5 = vld [vmem:[%s920_s0] sm:$0xff]  ;;  %v28_v6 = vld [vmem:[%s920_s0 + $0x8] sm:$0xff]  ;;  %v37_v52 = vshrl.u32 %v36_v51, 7 }
   0x3   :  { %71 = vmatpush1.bf16.msra.mxu0 %v633_v2  ;;  %v637_v7 = vld [vmem:[%s921_s3 + $0x4] ss:$8 sps:$4 sm:$0xff]   ;;  %v639_v8 = vld [vmem:[%s921_s3] ss:$8 sps:$4 sm:$0xff]   ;;  %v640_v9 = vld [vmem:[%s921_s3 + $0x14] ss:$8 sps:$4 sm:$0xff]   ;;  %v29_v10 = vpack.c.bf16 %v28_v6, %v27_v5 }
   0x4   :  { %72 = vmatprep.subr.bf16.mxu0 %v634_v3  ;;  %323 = vmatprep.subr.bf16.mxu1 %v637_v7  ;;  %v642_v11 = vld [vmem:[%s921_s3 + $0x10] ss:$8 sps:$4 sm:$0xff]   ;;  %v643_v12 = vld [vmem:[%s921_s3 + $0x24] ss:$8 sps:$4 sm:$0xff]   ;;  %v645_v13 = vld [vmem:[%s921_s3 + $0x20] ss:$8 sps:$4 sm:$0xff]  }
   0x5   :  { %324 = vmatpush1.bf16.msra.mxu1 %v639_v8  ;;  %v646_v14 = vld [vmem:[%s921_s3 + $0x34] ss:$8 sps:$4 sm:$0xff]   ;;  %v648_v15 = vld [vmem:[%s921_s3 + $0x30] ss:$8 sps:$4 sm:$0xff]   ;;  %v649_v16 = vld [vmem:[%s921_s3 + $0x44] ss:$8 sps:$4 sm:$0xff]  }
   0x6   :  { %325 = vmatprep.subr.bf16.mxu1 %v640_v9  ;;  %v651_v17 = vld [vmem:[%s921_s3 + $0x40] ss:$8 sps:$4 sm:$0xff]   ;;  %v652_v18 = vld [vmem:[%s921_s3 + $0x54] ss:$8 sps:$4 sm:$0xff]   ;;  %v654_v19 = vld [vmem:[%s921_s3 + $0x50] ss:$8 sps:$4 sm:$0xff]  }
   0x7   :  { %73 = vmatpush1.bf16.msra.mxu0 %v636_v4  ;;  %v655_v20 = vld [vmem:[%s921_s3 + $0x64] ss:$8 sps:$4 sm:$0xff]   ;;  %v657_v21 = vld [vmem:[%s921_s3 + $0x60] ss:$8 sps:$4 sm:$0xff]   ;;  %v658_v22 = vld [vmem:[%s921_s3 + $0x74] ss:$8 sps:$4 sm:$0xff]  }
   0x8   :  { %v660_v23 = vld [vmem:[%s921_s3 + $0x70] ss:$8 sps:$4 sm:$0xff]   ;;  %v661_v24 = vld [vmem:[%s921_s3 + $0x84] ss:$8 sps:$4 sm:$0xff]   ;;  %v663_v25 = vld [vmem:[%s921_s3 + $0x80] ss:$8 sps:$4 sm:$0xff]  }
   0x9   :  { %326 = vmatpush1.bf16.msra.mxu1 %v642_v11  ;;  %v664_v26 = vld [vmem:[%s921_s3 + $0x94] ss:$8 sps:$4 sm:$0xff]   ;;  %v666_v27 = vld [vmem:[%s921_s3 + $0x90] ss:$8 sps:$4 sm:$0xff]   ;;  %v667_v28 = vld [vmem:[%s921_s3 + $0xa4] ss:$8 sps:$4 sm:$0xff]  }
   0xa   :  { %558 = vmatmul.mubr.msk.bf16.vlgmr.msra.gmra.mrb[0].mxu0 %vm66_vm0, %v29_v10  ;;  %327 = vmatprep.subr.bf16.mxu1 %v643_v12  ;;  %v669_v29 = vld [vmem:[%s921_s3 + $0xa0] ss:$8 sps:$4 sm:$0xff]   ;;  %v670_v30 = vld [vmem:[%s921_s3 + $0xb4] ss:$8 sps:$4 sm:$0xff]   ;;  %v672_v31 = vld [vmem:[%s921_s3 + $0xb0] ss:$8 sps:$4 sm:$0xff]  }
   0xb   :  { %v673_v32 = vld [vmem:[%s921_s3 + $0xc4] ss:$8 sps:$4 sm:$0xff]   ;;  %v675_v33 = vld [vmem:[%s921_s3 + $0xc0] ss:$8 sps:$4 sm:$0xff]   ;;  %v676_v34 = vld [vmem:[%s921_s3 + $0xd4] ss:$8 sps:$4 sm:$0xff]  }
   0xc   :  { %v678_v35 = vld [vmem:[%s921_s3 + $0xd0] ss:$8 sps:$4 sm:$0xff]   ;;  %v679_v36 = vld [vmem:[%s921_s3 + $0xe4] ss:$8 sps:$4 sm:$0xff]   ;;  %v681_v37 = vld [vmem:[%s921_s3 + $0xe0] ss:$8 sps:$4 sm:$0xff]  }
   0xd   :  { %328 = vmatpush1.bf16.msra.mxu1 %v645_v13  ;;  %v682_v38 = vld [vmem:[%s921_s3 + $0xf4] ss:$8 sps:$4 sm:$0xff]   ;;  %v684_v39 = vld [vmem:[%s921_s3 + $0xf0] ss:$8 sps:$4 sm:$0xff]   ;;  %v685_v40 = vld [vmem:[%s922_s5 + $0x40] sm:$0xff]   ;;  %v38_v53 = vsub.s32 0, %v37_v52 }
   0xe   :  { %329 = vmatprep.subr.bf16.mxu1 %v646_v14  ;;  %v686_v41 = vld [vmem:[%s922_s5] sm:$0xff]   ;;  %608 = vmatprep.subr.bf16.mxu0 %v685_v40  ;;  %v687_v42 = vld [vmem:[%s922_s5 + $0x48] sm:$0xff]   ;;  %v689_v44 = vld [vmem:[%s922_s5 + $0x50] sm:$0xff]   ;;  %v42_v55 = vsub.s32 1, %v37_v52 }
   0xf   :  { %609 = vmatpush3.bf16.msra.mxu0 %v686_v41  ;;  %v688_v43 = vld [vmem:[%s922_s5 + $0x8] sm:$0xff]   ;;  %v690_v45 = vld [vmem:[%s922_s5 + $0x10] sm:$0xff]   ;;  %v691_v46 = vld [vmem:[%s922_s5 + $0x58] sm:$0xff]  }
  0x10   :  { %610 = vmatprep.subr.bf16.mxu0 %v687_v42  ;;  %v692_v47 = vld [vmem:[%s922_s5 + $0x18] sm:$0xff]   ;;  %v693_v48 = vld [vmem:[%s922_s5 + $0x60] sm:$0xff]   ;;  %v695_v50 = vld [vmem:[%s922_s5 + $0x68] sm:$0xff]  }
  0x11   :  { %330 = vmatpush1.bf16.msra.mxu1 %v648_v15  ;;  %v694_v49 = vld [vmem:[%s922_s5 + $0x20] sm:$0xff]   ;;  %v696_v8 = vld [vmem:[%s922_s5 + $0x28] sm:$0xff]   ;;  %v697_v9 = vld [vmem:[%s922_s5 + $0x70] sm:$0xff]  }
  0x12   :  { %331 = vmatprep.subr.bf16.mxu1 %v649_v16  ;;  %v34_v54 = vld [vmem:[%s923_s2] sm:$0x3]  ;;  %v698_v10 = vld [vmem:[%s922_s5 + $0x30] sm:$0xff]   ;;  %v699_v11 = vld [vmem:[%s922_s5 + $0x78] sm:$0xff]  }
  0x13   :  { %611 = vmatpush3.bf16.msra.mxu0 %v688_v43  ;;  %v39_v56 = vrot.slane %v34_v54, %v38_v53  ;;  %v43_v57 = vrot.slane %v34_v54, %v42_v55  ;;  %v700_v12 = vld [vmem:[%s922_s5 + $0x38] sm:$0xff]   ;;  %v151_v13 = vld [vmem:[%s924_s4] sm:$0x3] }
  0x14   :  { %612 = vmatprep.subr.bf16.mxu0 %v689_v44  ;;  %v156_v14 = vrot.slane %v151_v13, %v38_v53  ;;  %v160_v15 = vrot.slane %v151_v13, %v42_v55 }
  0x15   :  { %332 = vmatpush1.bf16.msra.mxu1 %v651_v17 }
  0x16   :  { %333 = vmatprep.subr.bf16.mxu1 %v652_v18 }
  0x17   :  { %613 = vmatpush3.bf16.msra.mxu0 %v690_v45 }
  0x18   :  { %614 = vmatprep.subr.bf16.mxu0 %v691_v46 }
  0x19   :  { %334 = vmatpush1.bf16.msra.mxu1 %v654_v19 }
  0x1a   :  { %335 = vmatprep.subr.bf16.mxu1 %v655_v20 }
  0x1b   :  { %615 = vmatpush3.bf16.msra.mxu0 %v692_v47 }
  0x1c   :  { %616 = vmatprep.subr.bf16.mxu0 %v693_v48 }
  0x1d   :  { %336 = vmatpush1.bf16.msra.mxu1 %v657_v21 }
  0x1e   :  { %337 = vmatprep.subr.bf16.mxu1 %v658_v22 }
  0x1f   :  { %617 = vmatpush3.bf16.msra.mxu0 %v694_v49 }
  0x20   :  { %618 = vmatprep.subr.bf16.mxu0 %v695_v50 }
  0x21   :  { %338 = vmatpush1.bf16.msra.mxu1 %v660_v23 }
  0x22   :  { %339 = vmatprep.subr.bf16.mxu1 %v661_v24 }
  0x23   :  { %619 = vmatpush3.bf16.msra.mxu0 %v696_v8 }
  0x24   :  { %620 = vmatprep.subr.bf16.mxu0 %v697_v9 }
  0x25   :  { %340 = vmatpush1.bf16.msra.mxu1 %v663_v25 }
  0x26   :  { %341 = vmatprep.subr.bf16.mxu1 %v664_v26 }
  0x27   :  { %621 = vmatpush3.bf16.msra.mxu0 %v698_v10 }
  0x28   :  { %622 = vmatprep.subr.bf16.mxu0 %v699_v11 }
  0x29   :  { %342 = vmatpush1.bf16.msra.mxu1 %v666_v27 }
  0x2a   :  { %343 = vmatprep.subr.bf16.mxu1 %v667_v28 }
  0x2b   :  { %623 = vmatpush3.bf16.msra.mxu0 %v700_v12 }
  0x2d   :  { %344 = vmatpush1.bf16.msra.mxu1 %v669_v29 }
  0x2e   :  { %345 = vmatprep.subr.bf16.mxu1 %v670_v30 }
  0x31   :  { %346 = vmatpush1.bf16.msra.mxu1 %v672_v31  ;;  %v591_v31 = vld [vmem:[%s925_s6] ss:$0 sm:$0xff] }
  0x32   :  { %347 = vmatprep.subr.bf16.mxu1 %v673_v32 }
  0x35   :  { %348 = vmatpush1.bf16.msra.mxu1 %v675_v33 }
  0x36   :  { %349 = vmatprep.subr.bf16.mxu1 %v676_v34 }
  0x39   :  { %350 = vmatpush1.bf16.msra.mxu1 %v678_v35 }
  0x3a   :  { %351 = vmatprep.subr.bf16.mxu1 %v679_v36 }
  0x3d   :  { %352 = vmatpush1.bf16.msra.mxu1 %v681_v37 }
  0x3e   :  { %353 = vmatprep.subr.bf16.mxu1 %v682_v38 }
  0x41   :  { %354 = vmatpush1.bf16.msra.mxu1 %v684_v39 }
  0xdd   :  { %v104_v58 = vpop.f32.mrb[0].mxu0 }
  0xde   :  { %v105_v59 = vadd.f32 %v104_v58, %v39_v56  ;;  %v106_v60 = vpop.f32.mrb[1].mxu0 }
  0xdf   :  { %v107_v61 = vadd.f32 %v106_v60, %v43_v57  ;;  %v108_v62 = vpop.f32.mrb[2].mxu0 }
  0xe0   :  { %v109_v63 = vadd.f32 %v108_v62, %v39_v56  ;;  %v110_v0 = vpop.f32.mrb[3].mxu0  ;;  %v113_v2 = vmax.f32 %v105_v59, 0.0 }
  0xe1   :  { %v111_v1 = vadd.f32 %v110_v0, %v43_v57  ;;  %v114_v4 = vmax.f32 %v107_v61, 0.0 }
  0xe2   :  { %v115_v3 = vmax.f32 %v109_v63, 0.0 }
  0xe3   :  { %v116_v5 = vmax.f32 %v111_v1, 0.0 }
  0xe4   :  { %v117_v6 = vpack.c.bf16 %v115_v3, %v113_v2 }
  0xe5   :  { %v118_v7 = vpack.c.bf16 %v116_v5, %v114_v4 }
  0xe7   :  { %355 = vmatprep.mubr.bf16.mxu1 %v118_v7 }
  0xe8   :  { %356 = vmatmul.mubr.bf16.vlgmr.msra.gmra.mrb[0].mxu1 %v117_v6 }
 0x1bb   :  { %v357_v16 = vpop.f32.mrb[0].mxu1 }
 0x1bc   :  { %v358_v17 = vadd.f32 %v357_v16, %v156_v14  ;;  %v359_v18 = vpop.f32.mrb[1].mxu1 }
 0x1bd   :  { %v360_v19 = vadd.f32 %v359_v18, %v160_v15  ;;  %v361_v20 = vpop.f32.mrb[2].mxu1 }
 0x1be   :  { %v362_v21 = vadd.f32 %v361_v20, %v156_v14  ;;  %v363_v22 = vpop.f32.mrb[3].mxu1  ;;  %v366_v24 = vmax.f32 %v358_v17, 0.0 }
 0x1bf   :  { %v364_v23 = vadd.f32 %v363_v22, %v160_v15  ;;  %v367_v26 = vmax.f32 %v360_v19, 0.0 }
 0x1c0   :  { %v368_v25 = vmax.f32 %v362_v21, 0.0 }
 0x1c1   :  { %v369_v27 = vmax.f32 %v364_v23, 0.0 }
 0x1c2   :  { %v370_v28 = vpack.c.bf16 %v368_v25, %v366_v24 }
 0x1c3   :  { %v371_v29 = vpack.c.bf16 %v369_v27, %v367_v26 }
 0x1c5   :  { %539 = vmatprep.mubr.bf16.mxu0 %v371_v29 }
 0x1c6   :  { %540 = vmatmul.mubr.bf16.vlgmr.msra.gmra.mrb[4].mxu0 %v370_v28 }
 0x299   :  { %v624_v30 = vpop.f32.mrb[4].mxu0 }
 0x29a   :  { %v625_v32 = vpop.f32.mrb[5].mxu0 }
 0x29b   :  { %v626_v33 = vadd.f32 %v625_v32, %v624_v30  ;;  %v627_v34 = vpop.f32.mrb[6].mxu0 }
 0x29c   :  { %v628_v35 = vpop.f32.mrb[7].mxu0 }
 0x29d   :  { %v542_v36 = vadd.f32 %v626_v33, %v591_v31  ;;  %v629_v37 = vadd.f32 %v628_v35, %v627_v34 }
 0x29f   :  { %548 = vst [vmem:[%s926_s7] sm:$0xff] %v542_v36  ;;  %v545_v38 = vadd.f32 %v629_v37, %v591_v31 }
 0x2a1   :  { %549 = vst [vmem:[%s926_s7 + $0x8] sm:$0xff] %v545_v38 }

</bundles_post_ra>
